<compile_context>
chip_gen: v7x
topology: tpu7x:2x2x1
jax: 0.10.0
libtpu: 0.0.40
codegen_flags: <defaults>
</compile_context>

<pallas_src>
import jax
import jax.numpy as jnp
from jax.experimental import pallas as pl
from jax.experimental.pallas import tpu as pltpu
from jax.scipy.stats import norm as _jsp_norm

_LANE = 128
_SUBLANE = 8
_LIKELIHOOD_BOUND = 1e-8
_SQRT1_2 = 0.7071067811865476


def _std_normal_cdf(z):
    """Phi(z) via the Abramowitz-Stegun 7.1.26 erf approximation (f32)."""
    w = z * _SQRT1_2
    a = jnp.abs(w)
    t = 1.0 / (1.0 + 0.3275911 * a)
    poly = t * (0.254829592
                + t * (-0.284496736
                       + t * (1.421413741
                              + t * (-1.453152027 + t * 1.061405429))))
    erf_abs = 1.0 - poly * jnp.exp(-a * a)
    erf = jnp.where(w >= 0.0, erf_abs, -erf_abs)
    return 0.5 * (1.0 + erf)


def _gaussian_likelihood_kernel(x_ref, sigma_ref, mu_ref, out_ref):
    """Elementwise Gaussian interval likelihood on one (tile_rows, 128) block."""
    x = x_ref[...]
    sigma = sigma_ref[...]
    mu = mu_ref[...]
    # Exact reciprocal (the approx EUP reciprocal's ~2^-12 rel-err is too coarse
    # for the CDF-difference); reused for both the upper and lower bound.
    inv_sigma = 1.0 / sigma
    centered = x - mu
    upper = (centered + 0.5) * inv_sigma
    lower = (centered - 0.5) * inv_sigma
    likelihood = _std_normal_cdf(upper) - _std_normal_cdf(lower)
    out_ref[...] = jnp.maximum(likelihood, _LIKELIHOOD_BOUND)


def _round_up(x, m):
    return ((x + m - 1) // m) * m


def gaussian_likelihood(inputs, hyper_sigma, hyper_mu, *, tile_rows=1024):
    """Pallas-backed GaussianModel.forward for arbitrary (matching) shapes."""
    assert inputs.shape == hyper_sigma.shape == hyper_mu.shape
    orig_shape = inputs.shape
    orig_dtype = inputs.dtype
    n = int(inputs.size)

    # Lane-dense packing: (rows, 128), rows padded to a multiple of the tile.
    rows = max(pl.cdiv(n, _LANE), 1)
    tile = min(tile_rows, _round_up(rows, _SUBLANE))
    rows_padded = _round_up(rows, tile)
    total = rows_padded * _LANE

    def as_slab(a, pad_value):
        flat = jnp.ravel(a).astype(jnp.float32)
        if total > n:  # pad only when the tail actually needs it
            flat = jnp.pad(flat, (0, total - n), constant_values=pad_value)
        return flat.reshape(rows_padded, _LANE)

    x2 = as_slab(inputs, 0.0)
    s2 = as_slab(hyper_sigma, 1.0)   # padded stds = 1.0 -> no div-by-zero in dead lanes
    m2 = as_slab(hyper_mu, 0.0)

    cost = pl.CostEstimate(
        flops=40 * total,            # ~polynomial + scaling per element
        transcendentals=2 * total,   # two exp() per element
        bytes_accessed=4 * total * 4,
    )

    block = pl.BlockSpec((tile, _LANE), lambda i: (i, 0))
    out = pl.pallas_call(
        _gaussian_likelihood_kernel,
        out_shape=jax.ShapeDtypeStruct((rows_padded, _LANE), jnp.float32),
        grid=(rows_padded // tile,),
        in_specs=[block, block, block],
        out_specs=block,
        compiler_params=pltpu.CompilerParams(dimension_semantics=("parallel",)),
        cost_estimate=cost,
    )(x2, s2, m2)

    return out.reshape(-1)[:n].reshape(orig_shape).astype(orig_dtype)


class GaussianModel:
    """Pallas/TPU port of the PyTorch GaussianModel (likelihood of quantized latents)."""

    def __call__(self, inputs, hyper_sigma, hyper_mu):
        return gaussian_likelihood(inputs, hyper_sigma, hyper_mu)

    forward = __call__


def _reference_forward(inputs, hyper_sigma, hyper_mu):
    """Pure-JAX reference using jax.scipy's exact normal CDF."""
    upper = (inputs - hyper_mu + 0.5) / hyper_sigma
    lower = (inputs - hyper_mu - 0.5) / hyper_sigma
    likelihood = _jsp_norm.cdf(upper) - _jsp_norm.cdf(lower)
    return jnp.maximum(likelihood, _LIKELIHOOD_BOUND)


if __name__ == "__main__":
    key = jax.random.PRNGKey(0)
    k_in, k_mu, k_sig = jax.random.split(key, 3)

    b, c, h, w = 2, 4, 16, 16
    # integer-like quantized latents, predicted means, and positive stds
    inputs = jnp.round(3.0 * jax.random.normal(k_in, (b, c, h, w), jnp.float32))
    hyper_mu = jax.random.normal(k_mu, (b, c, h, w), jnp.float32)
    hyper_sigma = jnp.exp(0.5 * jax.random.normal(k_sig, (b, c, h, w), jnp.float32))

    model = GaussianModel()
    likelihood = model(inputs, hyper_sigma, hyper_mu)
    jax.block_until_ready(likelihood)

    ref = _reference_forward(inputs, hyper_sigma, hyper_mu)

    assert likelihood.shape == (b, c, h, w)
    assert bool(jnp.all(likelihood >= _LIKELIHOOD_BOUND))
    assert bool(jnp.all(likelihood <= 1.0 + 1e-5))
    assert bool(jnp.allclose(likelihood, ref, rtol=1e-4, atol=1e-5))
    print("KERNEL_OK")
</pallas_src>

<mosaic_0001>
module attributes {stable_mosaic.version = 11 : i64} {
  func.func @_gaussian_likelihood_kernel(%arg0: i32, %arg1: memref<16x128xf32, #tpu.memory_space<vmem>>, %arg2: memref<16x128xf32, #tpu.memory_space<vmem>>, %arg3: memref<16x128xf32, #tpu.memory_space<vmem>>, %arg4: memref<16x128xf32, #tpu.memory_space<vmem>>) attributes {dimension_semantics = [#tpu.dimension_semantics<parallel>], iteration_bounds = array<i64: 1>, scalar_prefetch = 0 : i64, scratch_operands = 0 : i64, tpu.core_type = #tpu.core_type<tc>, window_params = [{transform_indices = @transform_0, window_bounds = array<i64: 16, 128>}, {transform_indices = @transform_1, window_bounds = array<i64: 16, 128>}, {transform_indices = @transform_2, window_bounds = array<i64: 16, 128>}, {transform_indices = @transform_3, window_bounds = array<i64: 16, 128>}]} {
    %c0 = arith.constant 0 : index
    %c0_0 = arith.constant 0 : index
    %0 = vector.load %arg1[%c0, %c0_0] : memref<16x128xf32, #tpu.memory_space<vmem>>, vector<16x128xf32>
    %c0_1 = arith.constant 0 : index
    %c0_2 = arith.constant 0 : index
    %1 = vector.load %arg2[%c0_1, %c0_2] : memref<16x128xf32, #tpu.memory_space<vmem>>, vector<16x128xf32>
    %c0_3 = arith.constant 0 : index
    %c0_4 = arith.constant 0 : index
    %2 = vector.load %arg3[%c0_3, %c0_4] : memref<16x128xf32, #tpu.memory_space<vmem>>, vector<16x128xf32>
    %cst = arith.constant 1.000000e+00 : f32
    %3 = vector.broadcast %cst : f32 to vector<16x128xf32>
    %4 = arith.divf %3, %1 : vector<16x128xf32>
    %5 = arith.subf %0, %2 : vector<16x128xf32>
    %cst_5 = arith.constant 5.000000e-01 : f32
    %6 = vector.broadcast %cst_5 : f32 to vector<16x128xf32>
    %7 = arith.addf %5, %6 : vector<16x128xf32>
    %8 = arith.mulf %7, %4 : vector<16x128xf32>
    %cst_6 = arith.constant 5.000000e-01 : f32
    %9 = vector.broadcast %cst_6 : f32 to vector<16x128xf32>
    %10 = arith.subf %5, %9 : vector<16x128xf32>
    %11 = arith.mulf %10, %4 : vector<16x128xf32>
    %cst_7 = arith.constant 0.707106769 : f32
    %12 = vector.broadcast %cst_7 : f32 to vector<16x128xf32>
    %13 = arith.mulf %8, %12 : vector<16x128xf32>
    %14 = math.absf %13 : vector<16x128xf32>
    %cst_8 = arith.constant 0.327591091 : f32
    %15 = vector.broadcast %cst_8 : f32 to vector<16x128xf32>
    %16 = arith.mulf %15, %14 : vector<16x128xf32>
    %cst_9 = arith.constant 1.000000e+00 : f32
    %17 = vector.broadcast %cst_9 : f32 to vector<16x128xf32>
    %18 = arith.addf %17, %16 : vector<16x128xf32>
    %cst_10 = arith.constant 1.000000e+00 : f32
    %19 = vector.broadcast %cst_10 : f32 to vector<16x128xf32>
    %20 = arith.divf %19, %18 : vector<16x128xf32>
    %cst_11 = arith.constant 1.06140542 : f32
    %21 = vector.broadcast %cst_11 : f32 to vector<16x128xf32>
    %22 = arith.mulf %20, %21 : vector<16x128xf32>
    %cst_12 = arith.constant -1.45315206 : f32
    %23 = vector.broadcast %cst_12 : f32 to vector<16x128xf32>
    %24 = arith.addf %23, %22 : vector<16x128xf32>
    %25 = arith.mulf %20, %24 : vector<16x128xf32>
    %cst_13 = arith.constant 1.42141378 : f32
    %26 = vector.broadcast %cst_13 : f32 to vector<16x128xf32>
    %27 = arith.addf %26, %25 : vector<16x128xf32>
    %28 = arith.mulf %20, %27 : vector<16x128xf32>
    %cst_14 = arith.constant -0.284496725 : f32
    %29 = vector.broadcast %cst_14 : f32 to vector<16x128xf32>
    %30 = arith.addf %29, %28 : vector<16x128xf32>
    %31 = arith.mulf %20, %30 : vector<16x128xf32>
    %cst_15 = arith.constant 0.254829586 : f32
    %32 = vector.broadcast %cst_15 : f32 to vector<16x128xf32>
    %33 = arith.addf %32, %31 : vector<16x128xf32>
    %34 = arith.mulf %20, %33 : vector<16x128xf32>
    %cst_16 = arith.constant 0.000000e+00 : f32
    %35 = vector.broadcast %cst_16 : f32 to vector<16x128xf32>
    %36 = arith.subf %35, %14 : vector<16x128xf32>
    %37 = arith.mulf %36, %14 : vector<16x128xf32>
    %38 = math.exp %37 : vector<16x128xf32>
    %39 = arith.mulf %34, %38 : vector<16x128xf32>
    %cst_17 = arith.constant 1.000000e+00 : f32
    %40 = vector.broadcast %cst_17 : f32 to vector<16x128xf32>
    %41 = arith.subf %40, %39 : vector<16x128xf32>
    %cst_18 = arith.constant 0.000000e+00 : f32
    %42 = vector.broadcast %cst_18 : f32 to vector<16x128xf32>
    %43 = arith.cmpf oge, %13, %42 : vector<16x128xf32>
    %cst_19 = arith.constant 0.000000e+00 : f32
    %44 = vector.broadcast %cst_19 : f32 to vector<16x128xf32>
    %45 = arith.subf %44, %41 : vector<16x128xf32>
    %46 = arith.select %43, %41, %45 : vector<16x128xi1>, vector<16x128xf32>
    %cst_20 = arith.constant 1.000000e+00 : f32
    %47 = vector.broadcast %cst_20 : f32 to vector<16x128xf32>
    %48 = arith.addf %47, %46 : vector<16x128xf32>
    %cst_21 = arith.constant 5.000000e-01 : f32
    %49 = vector.broadcast %cst_21 : f32 to vector<16x128xf32>
    %50 = arith.mulf %49, %48 : vector<16x128xf32>
    %cst_22 = arith.constant 0.707106769 : f32
    %51 = vector.broadcast %cst_22 : f32 to vector<16x128xf32>
    %52 = arith.mulf %11, %51 : vector<16x128xf32>
    %53 = math.absf %52 : vector<16x128xf32>
    %cst_23 = arith.constant 0.327591091 : f32
    %54 = vector.broadcast %cst_23 : f32 to vector<16x128xf32>
    %55 = arith.mulf %54, %53 : vector<16x128xf32>
    %cst_24 = arith.constant 1.000000e+00 : f32
    %56 = vector.broadcast %cst_24 : f32 to vector<16x128xf32>
    %57 = arith.addf %56, %55 : vector<16x128xf32>
    %cst_25 = arith.constant 1.000000e+00 : f32
    %58 = vector.broadcast %cst_25 : f32 to vector<16x128xf32>
    %59 = arith.divf %58, %57 : vector<16x128xf32>
    %cst_26 = arith.constant 1.06140542 : f32
    %60 = vector.broadcast %cst_26 : f32 to vector<16x128xf32>
    %61 = arith.mulf %59, %60 : vector<16x128xf32>
    %cst_27 = arith.constant -1.45315206 : f32
    %62 = vector.broadcast %cst_27 : f32 to vector<16x128xf32>
    %63 = arith.addf %62, %61 : vector<16x128xf32>
    %64 = arith.mulf %59, %63 : vector<16x128xf32>
    %cst_28 = arith.constant 1.42141378 : f32
    %65 = vector.broadcast %cst_28 : f32 to vector<16x128xf32>
    %66 = arith.addf %65, %64 : vector<16x128xf32>
    %67 = arith.mulf %59, %66 : vector<16x128xf32>
    %cst_29 = arith.constant -0.284496725 : f32
    %68 = vector.broadcast %cst_29 : f32 to vector<16x128xf32>
    %69 = arith.addf %68, %67 : vector<16x128xf32>
    %70 = arith.mulf %59, %69 : vector<16x128xf32>
    %cst_30 = arith.constant 0.254829586 : f32
    %71 = vector.broadcast %cst_30 : f32 to vector<16x128xf32>
    %72 = arith.addf %71, %70 : vector<16x128xf32>
    %73 = arith.mulf %59, %72 : vector<16x128xf32>
    %cst_31 = arith.constant 0.000000e+00 : f32
    %74 = vector.broadcast %cst_31 : f32 to vector<16x128xf32>
    %75 = arith.subf %74, %53 : vector<16x128xf32>
    %76 = arith.mulf %75, %53 : vector<16x128xf32>
    %77 = math.exp %76 : vector<16x128xf32>
    %78 = arith.mulf %73, %77 : vector<16x128xf32>
    %cst_32 = arith.constant 1.000000e+00 : f32
    %79 = vector.broadcast %cst_32 : f32 to vector<16x128xf32>
    %80 = arith.subf %79, %78 : vector<16x128xf32>
    %cst_33 = arith.constant 0.000000e+00 : f32
    %81 = vector.broadcast %cst_33 : f32 to vector<16x128xf32>
    %82 = arith.cmpf oge, %52, %81 : vector<16x128xf32>
    %cst_34 = arith.constant 0.000000e+00 : f32
    %83 = vector.broadcast %cst_34 : f32 to vector<16x128xf32>
    %84 = arith.subf %83, %80 : vector<16x128xf32>
    %85 = arith.select %82, %80, %84 : vector<16x128xi1>, vector<16x128xf32>
    %cst_35 = arith.constant 1.000000e+00 : f32
    %86 = vector.broadcast %cst_35 : f32 to vector<16x128xf32>
    %87 = arith.addf %86, %85 : vector<16x128xf32>
    %cst_36 = arith.constant 5.000000e-01 : f32
    %88 = vector.broadcast %cst_36 : f32 to vector<16x128xf32>
    %89 = arith.mulf %88, %87 : vector<16x128xf32>
    %90 = arith.subf %50, %89 : vector<16x128xf32>
    %cst_37 = arith.constant 9.99999993E-9 : f32
    %91 = vector.broadcast %cst_37 : f32 to vector<16x128xf32>
    %92 = arith.maximumf %90, %91 : vector<16x128xf32>
    %c0_38 = arith.constant 0 : index
    %c0_39 = arith.constant 0 : index
    %93 = vector.load %arg4[%c0_38, %c0_39] : memref<16x128xf32, #tpu.memory_space<vmem>>, vector<16x128xf32>
    tpu.vector_store %arg4[%c0_38, %c0_39], %92 {strides = array<i32>} : memref<16x128xf32, #tpu.memory_space<vmem>>, vector<16x128xf32>,
    return
  }
  func.func @transform_0(%arg0: i32) -> (i32, i32) {
    %c0_i32 = arith.constant 0 : i32
    %c0_i32_0 = arith.constant 0 : i32
    return %arg0, %c0_i32 : i32, i32
  }
  func.func @transform_1(%arg0: i32) -> (i32, i32) {
    %c0_i32 = arith.constant 0 : i32
    %c0_i32_0 = arith.constant 0 : i32
    return %arg0, %c0_i32 : i32, i32
  }
  func.func @transform_2(%arg0: i32) -> (i32, i32) {
    %c0_i32 = arith.constant 0 : i32
    %c0_i32_0 = arith.constant 0 : i32
    return %arg0, %c0_i32 : i32, i32
  }
  func.func @transform_3(%arg0: i32) -> (i32, i32) {
    %c0_i32 = arith.constant 0 : i32
    %c0_i32_0 = arith.constant 0 : i32
    return %arg0, %c0_i32 : i32, i32
  }
}

</mosaic_0001>

<bundles_post_ra>
// kernel: tpu_custom_call.1
= control target key start
LH: loop header
LB: loop body
LE: loop exit
PB: predicated region body
PF: predicated region fallthrough
CT: control target
= control target key end

     0   :  { %8 = vsyncpa [#allocation3], 0  ;;  %s435_s0 = inlined_call_operand.hbm [shape: f32[16,128], index: 0, kind: input, shape index: {}]   ;;  %s436_s1 = inlined_call_operand.hbm [shape: f32[16,128], index: 1, kind: input, shape index: {}]   ;;  %s437_s2 = inlined_call_operand.hbm [shape: f32[16,128], index: 2, kind: input, shape index: {}]   ;;  %s438_s3 = inlined_call_operand.hbm [shape: f32[16,128], index: 3, kind: output, shape index: {}]  }
   0x1   :  { %9 = vsyncpa [#allocation6], 0 }
   0x2   :  { %10 = vsyncpa [#allocation4], 0  ;;  %s326_s12 = smov [#allocation5]   ;;  %s327_s14 = smov [#allocation2]  }
   0x3   :  { %s28_s13 = sshll.u32 %s326_s12, 4  ;;  %s16_s15 = sshll.u32 %s327_s14, 4  ;;  %s29_s13 = int_to_ptr.vmem [resolvable:$true] %s28_s13  ;;  %s352_s15 = int_to_ptr.vmem [resolvable:$true] %s16_s15 }
   0x4   :  { %s232_s18 = scalar_lea.hbm %s436_s1, 256 }
   0x5   :  { %p233_p0 = scmp.ne.s32.totalorder %s436_s1, %s232_s18  ;;  %p236_p1 = scmp.lt.u32.totalorder %s232_s18, %s436_s1 }
   0x7   :  { %p238_p2 = pnand %p236_p1, %p233_p0 }
   0x9   :  { %241 = shalt.err (!%p238_p2)
}
   0xa   :  { %s242_s23 = scalar_lea.vmem %s29_s13, 256  ;;  %p247_p4 = scmp.lt.s32.totalorder %s29_s13, %s29_s13 }
   0xb   :  { %p243_p3 = scmp.ne.s32.totalorder %s29_s13, %s242_s23  ;;  %p248_p5 = scmp.lt.s32.totalorder %s242_s23, %s242_s23 }
   0xd   :  { %p249_p6 = por %p248_p5, %p247_p4 }
   0xf   :  { %p250_p7 = pnand %p249_p6, %p243_p3 }
  0x11   :  { %253 = shalt.err (!%p250_p7)
}
  0x12   :  { %s328_s24 = smov 128   ;;  %s329_s25 = smov 8  }
  0x13   :  { %34 = dma.hbm_to_vmem [thread:$0]  %s436_s1, 256, %s29_s13, [#allocation6], %s328_s24, %s328_s24, %s329_s25  }
  0x14   :  { %s254_s30 = scalar_lea.hbm %s435_s0, 256 }
  0x15   :  { %p255_p8 = scmp.ne.s32.totalorder %s435_s0, %s254_s30  ;;  %p258_p9 = scmp.lt.u32.totalorder %s254_s30, %s435_s0 }
  0x17   :  { %p260_p10 = pnand %p258_p9, %p255_p8 }
  0x19   :  { %263 = shalt.err (!%p260_p10)
}
  0x1a   :  { %s264_s8 = scalar_lea.vmem %s352_s15, 256  ;;  %p269_p12 = scmp.lt.s32.totalorder %s352_s15, %s352_s15 }
  0x1b   :  { %p265_p11 = scmp.ne.s32.totalorder %s352_s15, %s264_s8  ;;  %p270_p13 = scmp.lt.s32.totalorder %s264_s8, %s264_s8 }
  0x1d   :  { %p271_p0 = por %p270_p13, %p269_p12 }
  0x1f   :  { %p272_p1 = pnand %p271_p0, %p265_p11 }
  0x21   :  { %275 = shalt.err (!%p272_p1)
}
  0x22   :  { %22 = dma.hbm_to_vmem [thread:$0]  %s435_s0, 256, %s352_s15, [#allocation3], %s328_s24, %s328_s24, %s329_s25  }
  0x23   :  { %s330_s10 = smov [#allocation7]   ;;  %s276_s14 = scalar_lea.hbm %s437_s2, 256 }
  0x24   :  { %s40_s11 = sshll.u32 %s330_s10, 4  ;;  %p277_p2 = scmp.ne.s32.totalorder %s437_s2, %s276_s14  ;;  %s41_s11 = int_to_ptr.vmem [resolvable:$true] %s40_s11 }
  0x25   :  { %p280_p3 = scmp.lt.u32.totalorder %s276_s14, %s437_s2 }
  0x27   :  { %p282_p4 = pnand %p280_p3, %p277_p2 }
  0x29   :  { %285 = shalt.err (!%p282_p4)
}
  0x2a   :  { %s286_s20 = scalar_lea.vmem %s41_s11, 256  ;;  %p291_p6 = scmp.lt.s32.totalorder %s41_s11, %s41_s11 }
  0x2b   :  { %p287_p5 = scmp.ne.s32.totalorder %s41_s11, %s286_s20  ;;  %p292_p7 = scmp.lt.s32.totalorder %s286_s20, %s286_s20 }
  0x2d   :  { %p293_p8 = por %p292_p7, %p291_p6 }
  0x2f   :  { %p294_p9 = pnand %p293_p8, %p287_p5 }
  0x31   :  { %297 = shalt.err (!%p294_p9)
}
  0x32   :  { %46 = dma.hbm_to_vmem [thread:$0]  %s437_s2, 256, %s41_s11, [#allocation6], %s328_s24, %s328_s24, %s329_s25  }
  0x33   :  { %320 = dma.done.wait [#allocation3], 256  }
  0x34   :  { %321 = vsyncadd [#allocation3], 4294967040 }
  0x35   :  { %322 = dma.done.wait [#allocation6], 512  }
  0x36   :  { %323 = vsyncadd [#allocation6], 4294966784  ;;  %v58_v0 = vld [vmem:[#allocation5] sm:$0xff]  ;;  %v56_v1 = vld [vmem:[#allocation2] sm:$0xff]  ;;  %s331_s2 = smov [#allocation8]  }
  0x37   :  { %v60_v2 = vld [vmem:[#allocation7] sm:$0xff]  ;;  %212 = vrcp.f32 %v58_v0  ;;  %v59_v3 = vld [vmem:[#allocation5 + $0x8] sm:$0xff]  ;;  %v57_v4 = vld [vmem:[#allocation2 + $0x8] sm:$0xff]  ;;  %s191_s21 = sshll.u32 %s331_s2, 4  ;;  %s192_s21 = int_to_ptr.vmem [resolvable:$true] %s191_s21 }
  0x38   :  { %v61_v5 = vld [vmem:[#allocation7 + $0x8] sm:$0xff]  ;;  %214 = vrcp.f32 %v59_v3  ;;  %v66_v6 = vsub.f32 %v56_v1, %v60_v2  ;;  %s298_s22 = scalar_lea.vmem %s192_s21, 256  ;;  %p303_p11 = scmp.lt.s32.totalorder %s192_s21, %s192_s21 }
  0x39   :  { %v67_v7 = vsub.f32 %v57_v4, %v61_v5  ;;  %p299_p10 = scmp.ne.s32.totalorder %s192_s21, %s298_s22  ;;  %p304_p12 = scmp.lt.s32.totalorder %s298_s22, %s298_s22 }
  0x3a   :  { %v68_v8 = vadd.f32 0.5, %v66_v6  ;;  %v204_v9 = vadd.f32 -0.5, %v66_v6 }
  0x3b   :  { %v69_v10 = vadd.f32 0.5, %v67_v7  ;;  %v205_v11 = vadd.f32 -0.5, %v67_v7  ;;  %p305_p13 = por %p304_p12, %p303_p11 }
  0x3d   :  { %p306_p0 = pnand %p305_p13, %p299_p10 }
  0x41   :  { %v213_v12 = vpop.eup %212 }
  0x42   :  { %v215_v13 = vpop.eup %214  ;;  %v70_v14 = vmul.f32 %v213_v12, %v68_v8  ;;  %v74_v15 = vmul.f32 %v213_v12, %v204_v9 }
  0x43   :  { %v71_v16 = vmul.f32 %v215_v13, %v69_v10  ;;  %v75_v17 = vmul.f32 %v215_v13, %v205_v11 }
  0x44   :  { %v404_v18 = vmul.f32 0.70710677, %v70_v14  ;;  %v406_v19 = vmul.f32 0.70710677, %v74_v15 }
  0x45   :  { %v408_v20 = vmul.f32 0.70710677, %v71_v16  ;;  %v410_v21 = vmul.f32 0.70710677, %v75_v17 }
  0x46   :  { %v78_v22 = vand.u32 2147483647, %v404_v18  ;;  %v130_v23 = vand.u32 2147483647, %v406_v19  ;;  %vm118_vm0 = vcmp.ge.f32.partialorder %v404_v18, 0.0  ;;  %vm170_vm1 = vcmp.ge.f32.partialorder %v406_v19, 0.0 }
  0x47   :  { %v79_v24 = vand.u32 2147483647, %v408_v20  ;;  %v131_v25 = vand.u32 2147483647, %v410_v21  ;;  %vm119_vm2 = vcmp.ge.f32.partialorder %v408_v20, 0.0  ;;  %vm171_vm3 = vcmp.ge.f32.partialorder %v410_v21, 0.0 }
  0x48   :  { %v80_v26 = vmul.f32 0.3275911, %v78_v22  ;;  %v132_v27 = vmul.f32 0.3275911, %v130_v23  ;;  %v106_v34 = vsub.f32 0.0, %v78_v22  ;;  %v158_v35 = vsub.f32 0.0, %v130_v23 }
  0x49   :  { %v81_v28 = vmul.f32 0.3275911, %v79_v24  ;;  %v133_v31 = vmul.f32 0.3275911, %v131_v25  ;;  %v107_v37 = vsub.f32 0.0, %v79_v24  ;;  %v159_v40 = vsub.f32 0.0, %v131_v25 }
  0x4a   :  { %v82_v29 = vadd.f32 1.0, %v80_v26  ;;  %v134_v30 = vadd.f32 1.0, %v132_v27  ;;  %v108_v36 = vmul.f32 %v106_v34, %v78_v22  ;;  %v160_v38 = vmul.f32 %v158_v35, %v130_v23 }
  0x4b   :  { %v83_v32 = vadd.f32 1.0, %v81_v28  ;;  %v135_v33 = vadd.f32 1.0, %v133_v31  ;;  %v109_v45 = vmul.f32 %v107_v37, %v79_v24  ;;  %v161_v50 = vmul.f32 %v159_v40, %v131_v25 }
  0x4c   :  { %216 = vrcp.f32 %v82_v29  ;;  %v110_v43 = vmul.f32 1.442695, %v108_v36  ;;  %v162_v47 = vmul.f32 1.442695, %v160_v38 }
  0x4d   :  { %218 = vrcp.f32 %v134_v30  ;;  %v112_v55 = vmul.f32 1.442695, %v109_v45  ;;  %v164_v60 = vmul.f32 1.442695, %v161_v50 }
  0x4e   :  { %220 = vrcp.f32 %v83_v32 }
  0x4f   :  { %222 = vrcp.f32 %v135_v33 }
  0x50   :  { %224 = vpow2.f32 %v110_v43 }
  0x51   :  { %226 = vpow2.f32 %v162_v47 }
  0x52   :  { %228 = vpow2.f32 %v112_v55 }
  0x53   :  { %230 = vpow2.f32 %v164_v60 }
  0x56   :  { %v217_v39 = vpop.eup %216 }
  0x57   :  { %v219_v41 = vpop.eup %218  ;;  %v88_v42 = vmul.f32 1.0614054, %v217_v39 }
  0x58   :  { %v140_v44 = vmul.f32 1.0614054, %v219_v41  ;;  %v221_v48 = vpop.eup %220 }
  0x59   :  { %v90_v46 = vadd.f32 -1.4531521, %v88_v42  ;;  %v89_v52 = vmul.f32 1.0614054, %v221_v48  ;;  %v223_v53 = vpop.eup %222 }
  0x5a   :  { %v142_v49 = vadd.f32 -1.4531521, %v140_v44  ;;  %v141_v58 = vmul.f32 1.0614054, %v223_v53  ;;  %v225_v12 = vpop.eup %224 }
  0x5b   :  { %v92_v51 = vmul.f32 %v217_v39, %v90_v46  ;;  %v91_v57 = vadd.f32 -1.4531521, %v89_v52  ;;  %v227_v14 = vpop.eup %226 }
  0x5c   :  { %v144_v54 = vmul.f32 %v219_v41, %v142_v49  ;;  %v143_v63 = vadd.f32 -1.4531521, %v141_v58  ;;  %v229_v26 = vpop.eup %228 }
  0x5d   :  { %v94_v56 = vadd.f32 1.4214138, %v92_v51  ;;  %v93_v62 = vmul.f32 %v221_v48, %v91_v57  ;;  %v231_v31 = vpop.eup %230 }
  0x5e   :  { %v146_v59 = vadd.f32 1.4214138, %v144_v54  ;;  %v145_v3 = vmul.f32 %v223_v53, %v143_v63 }
  0x5f   :  { %v96_v61 = vmul.f32 %v217_v39, %v94_v56  ;;  %v95_v2 = vadd.f32 1.4214138, %v93_v62 }
  0x60   :  { %v148_v0 = vmul.f32 %v219_v41, %v146_v59  ;;  %v147_v7 = vadd.f32 1.4214138, %v145_v3 }
  0x61   :  { %v98_v1 = vadd.f32 -0.28449672, %v96_v61  ;;  %v97_v6 = vmul.f32 %v221_v48, %v95_v2 }
  0x62   :  { %v150_v4 = vadd.f32 -0.28449672, %v148_v0  ;;  %v149_v11 = vmul.f32 %v223_v53, %v147_v7 }
  0x63   :  { %v100_v5 = vmul.f32 %v217_v39, %v98_v1  ;;  %v99_v10 = vadd.f32 -0.28449672, %v97_v6 }
  0x64   :  { %v152_v8 = vmul.f32 %v219_v41, %v150_v4  ;;  %v151_v17 = vadd.f32 -0.28449672, %v149_v11 }
  0x65   :  { %v102_v9 = vadd.f32 0.2548296, %v100_v5  ;;  %v101_v16 = vmul.f32 %v221_v48, %v99_v10 }
  0x66   :  { %v154_v13 = vadd.f32 0.2548296, %v152_v8  ;;  %v153_v25 = vmul.f32 %v223_v53, %v151_v17 }
  0x67   :  { %v104_v15 = vmul.f32 %v217_v39, %v102_v9  ;;  %v103_v24 = vadd.f32 0.2548296, %v101_v16 }
  0x68   :  { %v156_v22 = vmul.f32 %v219_v41, %v154_v13  ;;  %v155_v30 = vadd.f32 0.2548296, %v153_v25 }
  0x69   :  { %v114_v23 = vmul.f32 %v225_v12, %v104_v15  ;;  %v105_v29 = vmul.f32 %v221_v48, %v103_v24 }
  0x6a   :  { %v166_v27 = vmul.f32 %v227_v14, %v156_v22  ;;  %v157_v35 = vmul.f32 %v223_v53, %v155_v30 }
  0x6b   :  { %v116_v28 = vsub.f32 1.0, %v114_v23  ;;  %v115_v34 = vmul.f32 %v229_v26, %v105_v29 }
  0x6c   :  { %v168_v32 = vsub.f32 1.0, %v166_v27  ;;  %v167_v39 = vmul.f32 %v231_v31, %v157_v35 }
  0x6d   :  { %v120_v33 = vsub.f32 0.0, %v116_v28  ;;  %v117_v38 = vsub.f32 1.0, %v115_v34 }
  0x6e   :  { %v172_v36 = vsub.f32 0.0, %v168_v32  ;;  %v169_v44 = vsub.f32 1.0, %v167_v39 }
  0x6f   :  { %v122_v37 = vsel %vm118_vm0, %v116_v28, %v120_v33  ;;  %v121_v43 = vsub.f32 0.0, %v117_v38 }
  0x70   :  { %v124_v40 = vadd.f32 1.0, %v122_v37  ;;  %v174_v41 = vsel %vm170_vm1, %v168_v32, %v172_v36  ;;  %v173_v47 = vsub.f32 0.0, %v169_v44 }
  0x71   :  { %v176_v42 = vadd.f32 1.0, %v174_v41  ;;  %v123_v46 = vsel %vm119_vm2, %v117_v38, %v121_v43 }
  0x72   :  { %v126_v45 = vmul.f32 0.5, %v124_v40  ;;  %v125_v19 = vadd.f32 1.0, %v123_v46  ;;  %v175_v49 = vsel %vm171_vm3, %v169_v44, %v173_v47 }
  0x73   :  { %v178_v18 = vmul.f32 0.5, %v176_v42  ;;  %v177_v51 = vadd.f32 1.0, %v175_v49 }
  0x74   :  { %v127_v50 = vmul.f32 0.5, %v125_v19 }
  0x75   :  { %v180_v48 = vsub.f32 %v126_v45, %v178_v18  ;;  %v179_v53 = vmul.f32 0.5, %v177_v51 }
  0x77   :  { %v182_v52 = vmax.f32 %v180_v48, 1e-08  ;;  %v181_v20 = vsub.f32 %v127_v50, %v179_v53 }
  0x79   :  { %184 = vst [vmem:[#allocation8] sm:$0xff] %v182_v52  ;;  %v183_v54 = vmax.f32 %v181_v20, 1e-08 }
  0x7b   :  { %185 = vst [vmem:[#allocation8 + $0x8] sm:$0xff] %v183_v54 }
  0x7c   :  { %309 = shalt.err (!%p306_p0)
}
  0x7d   :  { %s310_s27 = scalar_lea.hbm %s438_s3, 256 }
  0x7e   :  { %p311_p1 = scmp.ne.s32.totalorder %s438_s3, %s310_s27  ;;  %p314_p2 = scmp.lt.u32.totalorder %s310_s27, %s438_s3 }
  0x80   :  { %p316_p3 = pnand %p314_p2, %p311_p1 }
  0x82   :  { %319 = shalt.err (!%p316_p3)
}
  0x83   :  { %197 = dma.vmem_to_hbm [thread:$0]  %s192_s21, 256, %s438_s3, [#allocation4], %s328_s24, %s328_s24, %s329_s25  }
  0x84   :  { %324 = dma.done.wait [#allocation4], 256  }
  0x85   :  { %325 = vsyncadd [#allocation4], 4294967040 }
  0x86   :  { %201 = vsyncpa [#allocation3], 1 }
  0x87   :  { %202 = vsyncpa [#allocation6], 1 }
  0x88   :  { %203 = vsyncpa [#allocation4], 1 }

</bundles_post_ra>
